<compile_context>
chip_gen: v7x
topology: tpu7x:2x2x1
jax: 0.10.0
libtpu: 0.0.40
codegen_flags: <defaults>
</compile_context>

<pallas_src>
import jax
import jax.numpy as jnp
from jax import lax
from jax.experimental import pallas as pl
from jax.experimental.pallas import tpu as pltpu


def _mlp_kernel(x_ref, w1_ref, b1_ref, w2_ref, b2_ref, oT_ref):
    # x_ref : [block_m, input_n]   native row-major tile (contiguous HBM DMA)
    # w1_ref: [hidden_n, input_n]  (PyTorch nn.Linear layout)
    # b1_ref: [hidden_n, 1]
    # w2_ref: [output_n, hidden_n]
    # b2_ref: [output_n, 1]
    # oT_ref: [output_n, block_m]  (batch on lanes -> lane-dense store)
    hT = lax.dot_general(
        w1_ref[...], x_ref[...],
        dimension_numbers=(((1,), (1,)), ((), ())),    # W1 @ x^T
        preferred_element_type=jnp.float32)            # [hidden_n, block_m]
    hT = jnp.maximum(hT + b1_ref[...], 0.0)            # bias broadcasts over lanes
    yT = lax.dot_general(
        w2_ref[...], hT,
        dimension_numbers=(((1,), (0,)), ((), ())),    # W2 @ hT
        preferred_element_type=jnp.float32)            # [output_n, block_m]
    oT_ref[...] = jax.nn.sigmoid(yT + b2_ref[...]).astype(oT_ref.dtype)


def _num_tensorcores():
    """Best-effort TensorCore count (v7x has 2/chip); default to 1 if unknown."""
    try:
        info = pltpu.get_tpu_info()
    except Exception:
        return 1
    for name in ("num_cores", "core_count", "tensor_core_count", "num_tensorcores"):
        v = getattr(info, name, None)
        if isinstance(v, int) and v > 0:
            return v
    return 1


def _pick_block_m(batch, input_n, output_n, num_cores,
                  target_step_bytes=2 << 20, max_block_m=32768):
    """Batch tile (lane dim of the transposed compute).

    Sized so each grid step moves ~target_step_bytes of HBM (amortizes the
    ~0.35 us per-step overhead), capped at max_block_m, kept a multiple of 128,
    never larger than the (128-rounded) batch, and shrunk only as needed so
    multi-core parts get >= 2 steps per TensorCore."""
    bytes_per_row = 4 * (input_n + output_n)           # f32 in + out per batch row
    bm = (target_step_bytes // bytes_per_row) // 128 * 128
    bm = int(max(128, min(max_block_m, bm)))
    # Don't tile past the batch itself (round batch up to the 128-lane grain).
    bm = min(bm, max(128, pl.cdiv(batch, 128) * 128))
    if num_cores > 1:
        min_steps = 2 * num_cores                      # >= 2 steps per core
        if batch >= 128 * min_steps and pl.cdiv(batch, bm) < min_steps:
            bm = max(128, (pl.cdiv(batch, min_steps) // 128) * 128)
    return bm


def bi_net_forward(x, w1, b1, w2, b2, *, block_m=None):
    """Pallas forward for bi_Net.

    x  : [B, input_n]
    w1 : [hidden_n, input_n]   (PyTorch nn.Linear weight layout)
    b1 : [hidden_n]
    w2 : [output_n, hidden_n]
    b2 : [output_n]
    returns [B, output_n] = sigmoid(relu(x @ w1.T + b1) @ w2.T + b2)
    """
    B, input_n = x.shape
    hidden_n = w1.shape[0]
    output_n = w2.shape[0]

    if block_m is None:
        block_m = _pick_block_m(B, input_n, output_n, _num_tensorcores())

    grid = (pl.cdiv(B, block_m),)          # ragged last block handled by Pallas

    b1c = b1.reshape(hidden_n, 1)
    b2c = b2.reshape(output_n, 1)

    # Advisory cost hint so XLA can overlap the custom call with neighbors.
    flops = 2 * B * (input_n * hidden_n + hidden_n * output_n)
    bytes_accessed = 4 * (B * input_n + B * output_n
                          + hidden_n * (input_n + 1) + output_n * (hidden_n + 1))
    cost = pl.CostEstimate(flops=int(flops),
                           transcendentals=int(B * output_n),
                           bytes_accessed=int(bytes_accessed))

    outT = pl.pallas_call(
        _mlp_kernel,
        out_shape=jax.ShapeDtypeStruct((output_n, B), x.dtype),
        grid_spec=pl.GridSpec(
            grid=grid,
            in_specs=[
                pl.BlockSpec((block_m, input_n), lambda i: (i, 0)),    # x tile, native
                pl.BlockSpec((hidden_n, input_n), lambda i: (0, 0)),   # W1 resident
                pl.BlockSpec((hidden_n, 1), lambda i: (0, 0)),         # b1
                pl.BlockSpec((output_n, hidden_n), lambda i: (0, 0)),  # W2
                pl.BlockSpec((output_n, 1), lambda i: (0, 0)),         # b2
            ],
            out_specs=pl.BlockSpec((output_n, block_m), lambda i: (0, i)),
        ),
        compiler_params=pltpu.CompilerParams(
            dimension_semantics=("parallel",),        # batch axis shards across TCs
            vmem_limit_bytes=32 * 1024 * 1024),       # headroom over v5e's 16 MiB default
        cost_estimate=cost,
    )(x, w1, b1c, w2, b2c)

    # Consumer-facing layout is [B, output_n]; this transpose is over the
    # smallest array (output_n << input_n) and fuses into the consumer under jit.
    return outT.T


def make_params(key, input_n, hidden_n, output_n, dtype=jnp.float32):
    """torch.nn.Linear-style init, in PyTorch's native [out, in] layout."""
    k1, k2, k3, k4 = jax.random.split(key, 4)
    lim1 = 1.0 / (input_n ** 0.5)
    lim2 = 1.0 / (hidden_n ** 0.5)
    w1 = jax.random.uniform(k1, (hidden_n, input_n), dtype, -lim1, lim1)
    b1 = jax.random.uniform(k2, (hidden_n,), dtype, -lim1, lim1)
    w2 = jax.random.uniform(k3, (output_n, hidden_n), dtype, -lim2, lim2)
    b2 = jax.random.uniform(k4, (output_n,), dtype, -lim2, lim2)
    return w1, b1, w2, b2


def _reference(x, w1, b1, w2, b2):
    return jax.nn.sigmoid(jnp.maximum(x @ w1.T + b1, 0.0) @ w2.T + b2)


if __name__ == "__main__":
    key = jax.random.PRNGKey(0)
    kx, kx2, kp = jax.random.split(key, 3)

    input_n, hidden_n, output_n = 16, 32, 8
    w1, b1, w2, b2 = make_params(kp, input_n, hidden_n, output_n)

    # Small batch: runs as a single tile (block_m is clamped to the batch).
    batch = 256
    x = jax.random.normal(kx, (batch, input_n), jnp.float32)
    out = bi_net_forward(x, w1, b1, w2, b2)
    jax.block_until_ready(out)
    ref = _reference(x, w1, b1, w2, b2)
    assert out.shape == (batch, output_n)
    assert jnp.allclose(out, ref, atol=1e-5, rtol=1e-5)

    # Ragged batch: exercises Pallas partial-last-block handling (no pad copy).
    batch2 = 200
    x2 = jax.random.normal(kx2, (batch2, input_n), jnp.float32)
    out2 = bi_net_forward(x2, w1, b1, w2, b2)
    jax.block_until_ready(out2)
    ref2 = _reference(x2, w1, b1, w2, b2)
    assert out2.shape == (batch2, output_n)
    assert jnp.allclose(out2, ref2, atol=1e-5, rtol=1e-5)

    # Multi-step grid path (explicit small block keeps the demo quick).
    batch3 = 1024
    x3 = jax.random.normal(kx, (batch3, input_n), jnp.float32)
    out3 = bi_net_forward(x3, w1, b1, w2, b2, block_m=256)
    jax.block_until_ready(out3)
    ref3 = _reference(x3, w1, b1, w2, b2)
    assert out3.shape == (batch3, output_n)
    assert jnp.allclose(out3, ref3, atol=1e-5, rtol=1e-5)

    print("KERNEL_OK")
</pallas_src>

<mosaic_0001>
module attributes {stable_mosaic.version = 11 : i64} {
  func.func @_mlp_kernel(%arg0: i32, %arg1: memref<256x16xf32, #tpu.memory_space<vmem>>, %arg2: memref<32x16xf32, #tpu.memory_space<vmem>>, %arg3: memref<32x1xf32, #tpu.memory_space<vmem>>, %arg4: memref<8x32xf32, #tpu.memory_space<vmem>>, %arg5: memref<8x1xf32, #tpu.memory_space<vmem>>, %arg6: memref<8x256xf32, #tpu.memory_space<vmem>>) attributes {dimension_semantics = [#tpu.dimension_semantics<parallel>], iteration_bounds = array<i64: 1>, scalar_prefetch = 0 : i64, scratch_operands = 0 : i64, tpu.core_type = #tpu.core_type<tc>, window_params = [{transform_indices = @transform_0, window_bounds = array<i64: 256, 16>}, {pipeline_mode = #tpu.pipeline_mode<synchronous>, transform_indices = @transform_1, window_bounds = array<i64: 32, 16>}, {pipeline_mode = #tpu.pipeline_mode<synchronous>, transform_indices = @transform_2, window_bounds = array<i64: 32, 1>}, {pipeline_mode = #tpu.pipeline_mode<synchronous>, transform_indices = @transform_3, window_bounds = array<i64: 8, 32>}, {pipeline_mode = #tpu.pipeline_mode<synchronous>, transform_indices = @transform_4, window_bounds = array<i64: 8, 1>}, {transform_indices = @transform_5, window_bounds = array<i64: 8, 256>}]} {
    %c0 = arith.constant 0 : index
    %c0_0 = arith.constant 0 : index
    %0 = vector.load %arg2[%c0, %c0_0] : memref<32x16xf32, #tpu.memory_space<vmem>>, vector<32x16xf32>
    %c0_1 = arith.constant 0 : index
    %c0_2 = arith.constant 0 : index
    %1 = vector.load %arg1[%c0_1, %c0_2] : memref<256x16xf32, #tpu.memory_space<vmem>>, vector<256x16xf32>
    %cst = arith.constant dense<0.000000e+00> : vector<32x256xf32>
    %2 = tpu.matmul %0, %1, %cst {dimension_numbers = #tpu.dot_dimension_numbers<[1], [1], [0], [0], [0, 0, 1, 0], [], []>} : vector<32x16xf32>, vector<256x16xf32>, vector<32x256xf32> -> vector<32x256xf32>
    %c0_3 = arith.constant 0 : index
    %c0_4 = arith.constant 0 : index
    %3 = vector.load %arg3[%c0_3, %c0_4] : memref<32x1xf32, #tpu.memory_space<vmem>>, vector<32x1xf32>
    %4 = vector.broadcast %3 : vector<32x1xf32> to vector<32x256xf32>
    %5 = arith.addf %2, %4 : vector<32x256xf32>
    %cst_5 = arith.constant 0.000000e+00 : f32
    %6 = vector.broadcast %cst_5 : f32 to vector<32x256xf32>
    %7 = arith.maximumf %5, %6 : vector<32x256xf32>
    %c0_6 = arith.constant 0 : index
    %c0_7 = arith.constant 0 : index
    %8 = vector.load %arg4[%c0_6, %c0_7] : memref<8x32xf32, #tpu.memory_space<vmem>>, vector<8x32xf32>
    %cst_8 = arith.constant dense<0.000000e+00> : vector<8x256xf32>
    %9 = tpu.matmul %8, %7, %cst_8 {dimension_numbers = #tpu.dot_dimension_numbers<[1], [0], [0], [1], [0, 0, 1, 1], [], []>} : vector<8x32xf32>, vector<32x256xf32>, vector<8x256xf32> -> vector<8x256xf32>
    %c0_9 = arith.constant 0 : index
    %c0_10 = arith.constant 0 : index
    %10 = vector.load %arg5[%c0_9, %c0_10] : memref<8x1xf32, #tpu.memory_space<vmem>>, vector<8x1xf32>
    %11 = vector.broadcast %10 : vector<8x1xf32> to vector<8x256xf32>
    %12 = arith.addf %9, %11 : vector<8x256xf32>
    %13 = arith.negf %12 : vector<8x256xf32>
    %14 = math.exp %13 : vector<8x256xf32>
    %cst_11 = arith.constant 1.000000e+00 : f32
    %15 = vector.broadcast %cst_11 : f32 to vector<8x256xf32>
    %16 = arith.addf %15, %14 : vector<8x256xf32>
    %17 = arith.divf %15, %16 : vector<8x256xf32>
    %c0_12 = arith.constant 0 : index
    %c0_13 = arith.constant 0 : index
    %18 = vector.load %arg6[%c0_12, %c0_13] : memref<8x256xf32, #tpu.memory_space<vmem>>, vector<8x256xf32>
    tpu.vector_store %arg6[%c0_12, %c0_13], %17 {strides = array<i32>} : memref<8x256xf32, #tpu.memory_space<vmem>>, vector<8x256xf32>,
    return
  }
  func.func @transform_0(%arg0: i32) -> (i32, i32) {
    %c0_i32 = arith.constant 0 : i32
    %c0_i32_0 = arith.constant 0 : i32
    return %arg0, %c0_i32 : i32, i32
  }
  func.func @transform_1(%arg0: i32) -> (i32, i32) {
    %c0_i32 = arith.constant 0 : i32
    %c0_i32_0 = arith.constant 0 : i32
    %c0_i32_1 = arith.constant 0 : i32
    return %c0_i32, %c0_i32_0 : i32, i32
  }
  func.func @transform_2(%arg0: i32) -> (i32, i32) {
    %c0_i32 = arith.constant 0 : i32
    %c0_i32_0 = arith.constant 0 : i32
    %c0_i32_1 = arith.constant 0 : i32
    return %c0_i32, %c0_i32_0 : i32, i32
  }
  func.func @transform_3(%arg0: i32) -> (i32, i32) {
    %c0_i32 = arith.constant 0 : i32
    %c0_i32_0 = arith.constant 0 : i32
    %c0_i32_1 = arith.constant 0 : i32
    return %c0_i32, %c0_i32_0 : i32, i32
  }
  func.func @transform_4(%arg0: i32) -> (i32, i32) {
    %c0_i32 = arith.constant 0 : i32
    %c0_i32_0 = arith.constant 0 : i32
    %c0_i32_1 = arith.constant 0 : i32
    return %c0_i32, %c0_i32_0 : i32, i32
  }
  func.func @transform_5(%arg0: i32) -> (i32, i32) {
    %c0_i32 = arith.constant 0 : i32
    %c0_i32_0 = arith.constant 0 : i32
    return %c0_i32, %arg0 : i32, i32
  }
}

</mosaic_0001>

<bundles_post_ra>
// kernel: tpu_custom_call.1
= control target key start
LH: loop header
LB: loop body
LE: loop exit
PB: predicated region body
PF: predicated region fallthrough
CT: control target
= control target key end

     0   :  { %vm81_vm0 = vcmask 130048   ;;  %v569_v7 = vmov 0   ;;  %s786_s0 = inlined_call_operand.vmem [shape: f32[256,16], index: 0, kind: input, shape index: {}]   ;;  %s787_s1 = inlined_call_operand.vmem [shape: f32[32,16], index: 1, kind: input, shape index: {}]   ;;  %s788_s2 = inlined_call_operand.vmem [shape: f32[32,1], index: 2, kind: input, shape index: {}]   ;;  %s789_s3 = inlined_call_operand.vmem [shape: f32[8,32], index: 3, kind: input, shape index: {}]   ;;  %s790_s4 = inlined_call_operand.vmem [shape: f32[8,1], index: 4, kind: input, shape index: {}]   ;;  %s791_s5 = inlined_call_operand.hbm [shape: f32[8,256], index: 5, kind: output, shape index: {}]  }
   0x1   :  { %v41_v0 = vld [vmem:[%s786_s0 + $0x80] sm:$0xff]  ;;  %v42_v1 = vld [vmem:[%s786_s0 + $0x88] sm:$0xff]  ;;  %vm613_vm1 = vmpackc.low %vm81_vm0, %vm81_vm0  ;;  %535 = vset.pattern.permute.xlu0 %v569_v7  ;;  %536 = vset.pattern.permute.xlu1 %v569_v7 }
   0x2   :  { %v25_v2 = vld [vmem:[%s786_s0] sm:$0xff]  ;;  %v476_v3 = vpack.c.bf16 %v42_v1, %v41_v0  ;;  %v26_v5 = vld [vmem:[%s786_s0 + $0x8] sm:$0xff]  ;;  %v43_v6 = vld [vmem:[%s786_s0 + $0x90] sm:$0xff] }
   0x3   :  { %v479_v8 = vpack.c.bf16 %v26_v5, %v25_v2  ;;  %v44_v9 = vld [vmem:[%s786_s0 + $0x98] sm:$0xff]  ;;  %v27_v11 = vld [vmem:[%s786_s0 + $0x10] sm:$0xff]  ;;  %v45_v13 = vld [vmem:[%s786_s0 + $0xa0] sm:$0xff] }
   0x4   :  { %478 = vmatprep.subr.msk.bf16.mxu0 %vm613_vm1, %v476_v3  ;;  %v482_v10 = vpack.c.bf16 %v44_v9, %v43_v6  ;;  %v28_v12 = vld [vmem:[%s786_s0 + $0x18] sm:$0xff]  ;;  %v46_v14 = vld [vmem:[%s786_s0 + $0xa8] sm:$0xff]  ;;  %v21_v17 = vld [vmem:[%s787_s1] sm:$0xff] }
   0x5   :  { %481 = vmatpush3.bf16.xpose.msk.msra.mxu0 %vm613_vm1, %v479_v8  ;;  %v485_v15 = vpack.c.bf16 %v28_v12, %v27_v11  ;;  %v488_v16 = vpack.c.bf16 %v46_v14, %v45_v13  ;;  %v29_v18 = vld [vmem:[%s786_s0 + $0x20] sm:$0xff]  ;;  %468 = vmatprep.mubr.msk.f32.mxu0 %vm81_vm0, %v21_v17  ;;  %v30_v20 = vld [vmem:[%s786_s0 + $0x28] sm:$0xff]  ;;  %v47_v21 = vld [vmem:[%s786_s0 + $0xb0] sm:$0xff] }
   0x6   :  { %484 = vmatprep.subr.msk.bf16.mxu0 %vm613_vm1, %v482_v10  ;;  %v57_v19 = vld [vmem:[%s788_s2] sm:$0xff]  ;;  %v59_v22 = vld [vmem:[%s788_s2 + $0x10] sm:$0xff]  ;;  %v48_v23 = vld [vmem:[%s786_s0 + $0xb8] sm:$0xff] }
   0x7   :  { %63 = vperm.xlu0 %535, %v57_v19   ;;  %v58_v24 = vld [vmem:[%s788_s2 + $0x8] sm:$0xff]  ;;  %73 = vperm.xlu1 %536, %v59_v22  }
   0xd   :  { %487 = vmatpush3.bf16.xpose.msk.msra.mxu0 %vm613_vm1, %v485_v15 }
   0xe   :  { %490 = vmatprep.subr.msk.bf16.mxu0 %vm613_vm1, %v488_v16 }
   0xf   :  { %10 = vsyncpa [#allocation3], 0  ;;  %v60_v25 = vld [vmem:[%s788_s2 + $0x18] sm:$0xff]  ;;  %v491_v26 = vpack.c.bf16 %v30_v20, %v29_v18  ;;  %v494_v27 = vpack.c.bf16 %v48_v23, %v47_v21  ;;  %68 = vperm.xlu0 %535, %v58_v24   ;;  %v288_v28 = vld [vmem:[%s790_s4] sm:$0xff]  ;;  %v570_v59 = vmov 0.0   ;;  %vm294_vm2 = vcmask 261120  }
  0x10   :  { %78 = vperm.xlu1 %536, %v60_v25   ;;  %v31_v29 = vld [vmem:[%s786_s0 + $0x30] sm:$0xff]  ;;  %v32_v30 = vld [vmem:[%s786_s0 + $0x38] sm:$0xff]  ;;  %v49_v31 = vld [vmem:[%s786_s0 + $0xc0] sm:$0xff]  ;;  %362 = vmatprep.mubr.f32.mxu1 %v570_v59  ;;  %s571_s21 = smov [#allocation2]  }
  0x11   :  { %v50_v32 = vld [vmem:[%s786_s0 + $0xc8] sm:$0xff]  ;;  %v497_v33 = vpack.c.bf16 %v32_v30, %v31_v29  ;;  %v33_v35 = vld [vmem:[%s786_s0 + $0x40] sm:$0xff]  ;;  %v51_v37 = vld [vmem:[%s786_s0 + $0xd0] sm:$0xff]  ;;  %s389_s22 = sshll.u32 %s571_s21, 4  ;;  %s390_s22 = int_to_ptr.vmem [resolvable:$true] %s389_s22 }
  0x12   :  { %v500_v34 = vpack.c.bf16 %v50_v32, %v49_v31  ;;  %v34_v36 = vld [vmem:[%s786_s0 + $0x48] sm:$0xff]  ;;  %v52_v38 = vld [vmem:[%s786_s0 + $0xd8] sm:$0xff]  ;;  %v35_v41 = vld [vmem:[%s786_s0 + $0x50] sm:$0xff]  ;;  %p550_p1 = scmp.lt.s32.totalorder %s390_s22, %s390_s22 }
  0x13   :  { %291 = vperm.xlu0 %535, %v288_v28   ;;  %v503_v39 = vpack.c.bf16 %v34_v36, %v33_v35  ;;  %v506_v40 = vpack.c.bf16 %v52_v38, %v51_v37  ;;  %v36_v42 = vld [vmem:[%s786_s0 + $0x58] sm:$0xff]  ;;  %v53_v43 = vld [vmem:[%s786_s0 + $0xe0] sm:$0xff]  ;;  %v54_v44 = vld [vmem:[%s786_s0 + $0xe8] sm:$0xff] }
  0x14   :  { %v509_v45 = vpack.c.bf16 %v36_v42, %v35_v41  ;;  %v512_v46 = vpack.c.bf16 %v54_v44, %v53_v43  ;;  %v37_v47 = vld [vmem:[%s786_s0 + $0x60] sm:$0xff]  ;;  %v38_v48 = vld [vmem:[%s786_s0 + $0x68] sm:$0xff]  ;;  %v55_v49 = vld [vmem:[%s786_s0 + $0xf0] sm:$0xff] }
  0x15   :  { %493 = vmatpush3.bf16.xpose.msk.msra.mxu0 %vm613_vm1, %v491_v26  ;;  %v56_v50 = vld [vmem:[%s786_s0 + $0xf8] sm:$0xff]  ;;  %v515_v51 = vpack.c.bf16 %v38_v48, %v37_v47  ;;  %v39_v53 = vld [vmem:[%s786_s0 + $0x70] sm:$0xff]  ;;  %v22_v56 = vld [vmem:[%s787_s1 + $0x8] sm:$0xff] }
  0x16   :  { %496 = vmatprep.subr.msk.bf16.mxu0 %vm613_vm1, %v494_v27  ;;  %v518_v52 = vpack.c.bf16 %v56_v50, %v55_v49  ;;  %v40_v54 = vld [vmem:[%s786_s0 + $0x78] sm:$0xff]  ;;  %v23_v57 = vld [vmem:[%s787_s1 + $0x10] sm:$0xff]  ;;  %v287_v28 = vld [vmem:[%s789_s3] sm:$0xff]  ;;  %s545_s3 = scalar_lea.vmem %s390_s22, 256 }
  0x17   :  { %v521_v55 = vpack.c.bf16 %v40_v54, %v39_v53  ;;  %v24_v58 = vld [vmem:[%s787_s1 + $0x18] sm:$0xff]  ;;  %p546_p0 = scmp.ne.s32.totalorder %s390_s22, %s545_s3  ;;  %p551_p2 = scmp.lt.s32.totalorder %s545_s3, %s545_s3 }
  0x19   :  { %p552_p3 = por %p551_p2, %p550_p1 }
  0x1b   :  { %p553_p4 = pnand %p552_p3, %p546_p0 }
  0x1d   :  { %499 = vmatpush3.bf16.xpose.msk.msra.mxu0 %vm613_vm1, %v497_v33 }
  0x1e   :  { %502 = vmatprep.subr.msk.bf16.mxu0 %vm613_vm1, %v500_v34 }
  0x25   :  { %505 = vmatpush3.bf16.xpose.msk.msra.mxu0 %vm613_vm1, %v503_v39 }
  0x26   :  { %508 = vmatprep.subr.msk.bf16.mxu0 %vm613_vm1, %v506_v40 }
  0x2d   :  { %511 = vmatpush3.bf16.xpose.msk.msra.mxu0 %vm613_vm1, %v509_v45 }
  0x2e   :  { %514 = vmatprep.subr.msk.bf16.mxu0 %vm613_vm1, %v512_v46 }
  0x35   :  { %517 = vmatpush3.bf16.xpose.msk.msra.mxu0 %vm613_vm1, %v515_v51 }
  0x36   :  { %520 = vmatprep.subr.msk.bf16.mxu0 %vm613_vm1, %v518_v52 }
  0x3d   :  { %523 = vmatpush3.bf16.xpose.msk.msra.mxu0 %vm613_vm1, %v521_v55 }
  0x44   :  { %469 = vmatmul.mubr.msk.f32.vlgmr.msra.gmra.mrb[0].mxu0 %vm81_vm0, %v21_v17 }
  0x45   :  { %470 = vmatprep.mubr.msk.f32.mxu0 %vm81_vm0, %v22_v56 }
  0x48   :  { %471 = vmatmul.mubr.msk.f32.gmra.mrb[2].mxu0 %vm81_vm0, %v22_v56 }
  0x49   :  { %472 = vmatprep.mubr.msk.f32.mxu0 %vm81_vm0, %v23_v57 }
  0x4c   :  { %473 = vmatmul.mubr.msk.f32.gmra.mrb[4].mxu0 %vm81_vm0, %v23_v57 }
  0x4d   :  { %474 = vmatprep.mubr.msk.f32.mxu0 %vm81_vm0, %v24_v58 }
  0x50   :  { %475 = vmatmul.mubr.msk.f32.gmra.mrb[6].mxu0 %vm81_vm0, %v24_v58 }
  0x86   :  { %v64_v60 = vpop.permute.xlu0 %63  ;;  %v74_v5 = vpop.permute.xlu1 %73 }
  0x8e   :  { %v69_v0 = vpop.permute.xlu0 %68 }
  0x8f   :  { %v79_v16 = vpop.permute.xlu1 %78 }
  0x92   :  { %v292_v29 = vpop.permute.xlu0 %291 }
 0x117   :  { %v256_v61 = vpop.f32.mrb[0].mxu0 }
 0x118   :  { %v258_v62 = vpop.f32.mrb[1].mxu0  ;;  %v257_v63 = vadd.f32 %v256_v61, %v64_v60 }
 0x119   :  { %v259_v1 = vadd.f32 %v258_v62, %v64_v60 }
 0x11a   :  { %v279_v7 = vmax.f32 %v257_v63, 0.0 }
 0x11b   :  { %v262_v2 = vpop.f32.mrb[2].mxu0  ;;  %v280_v9 = vmax.f32 %v259_v1, 0.0 }
 0x11c   :  { %v263_v3 = vadd.f32 %v262_v2, %v69_v0  ;;  %v264_v4 = vpop.f32.mrb[3].mxu0 }
 0x11d   :  { %v265_v6 = vadd.f32 %v264_v4, %v69_v0 }
 0x11e   :  { %v281_v8 = vmax.f32 %v263_v3, 0.0 }
 0x11f   :  { %v282_v10 = vmax.f32 %v265_v6, 0.0  ;;  %v268_v11 = vpop.f32.mrb[4].mxu0 }
 0x120   :  { %v270_v12 = vpop.f32.mrb[5].mxu0  ;;  %v526_v13 = vpack.c.bf16 %v281_v8, %v279_v7  ;;  %v269_v15 = vadd.f32 %v268_v11, %v74_v5 }
 0x121   :  { %v524_v14 = vpack.c.bf16 %v282_v10, %v280_v9  ;;  %v271_v17 = vadd.f32 %v270_v12, %v74_v5 }
 0x122   :  { %v283_v22 = vmax.f32 %v269_v15, 0.0 }
 0x123   :  { %v274_v18 = vpop.f32.mrb[6].mxu0  ;;  %525 = vmatprep.subr.bf16.mxu1 %v524_v14  ;;  %v284_v24 = vmax.f32 %v271_v17, 0.0 }
 0x124   :  { %v275_v19 = vadd.f32 %v274_v18, %v79_v16  ;;  %v276_v20 = vpop.f32.mrb[7].mxu0  ;;  %527 = vmatpush1.bf16.msra.mxu1 %v526_v13 }
 0x125   :  { %v277_v21 = vadd.f32 %v276_v20, %v79_v16 }
 0x126   :  { %v285_v23 = vmax.f32 %v275_v19, 0.0 }
 0x127   :  { %v286_v25 = vmax.f32 %v277_v21, 0.0 }
 0x128   :  { %v530_v26 = vpack.c.bf16 %v285_v23, %v283_v22 }
 0x129   :  { %v528_v27 = vpack.c.bf16 %v286_v25, %v284_v24 }
 0x12b   :  { %529 = vmatprep.subr.bf16.mxu1 %v528_v27 }
 0x12c   :  { %531 = vmatpush1.bf16.msra.mxu1 %v530_v26 }
 0x12f   :  { %433 = vmatmul.mubr.msk.f32.vlgmr.msra.gmra.mrb[0].mxu1 %vm294_vm2, %v287_v28 }
 0x202   :  { %v364_v30 = vpop.f32.mrb[0].mxu1 }
 0x203   :  { %v365_v31 = vadd.f32 %v364_v30, %v292_v29  ;;  %v366_v32 = vpop.f32.mrb[1].mxu1 }
 0x204   :  { %v367_v33 = vadd.f32 %v366_v32, %v292_v29 }
 0x205   :  { %v434_v34 = vmul.f32 -1.442695, %v365_v31 }
 0x206   :  { %v435_v35 = vmul.f32 -1.442695, %v367_v33 }
 0x207   :  { %537 = vpow2.f32 %v434_v34 }
 0x208   :  { %539 = vpow2.f32 %v435_v35 }
 0x211   :  { %v538_v36 = vpop.eup %537 }
 0x212   :  { %v540_v37 = vpop.eup %539  ;;  %v375_v38 = vadd.f32 1.0, %v538_v36 }
 0x213   :  { %v376_v39 = vadd.f32 1.0, %v540_v37 }
 0x214   :  { %541 = vrcp.f32 %v375_v38 }
 0x215   :  { %543 = vrcp.f32 %v376_v39 }
 0x21e   :  { %v542_v40 = vpop.eup %541 }
 0x21f   :  { %v544_v41 = vpop.eup %543  ;;  %381 = vst [vmem:[#allocation2] sm:$0xff] %v542_v40 }
 0x220   :  { %382 = vst [vmem:[#allocation2 + $0x8] sm:$0xff] %v544_v41 }
 0x221   :  { %556 = shalt.err (!%p553_p4)
}
 0x222   :  { %s557_s25 = scalar_lea.hbm %s791_s5, 256 }
 0x223   :  { %p558_p5 = scmp.ne.s32.totalorder %s791_s5, %s557_s25  ;;  %p561_p6 = scmp.lt.u32.totalorder %s557_s25, %s791_s5 }
 0x225   :  { %p563_p7 = pnand %p561_p6, %p558_p5 }
 0x227   :  { %566 = shalt.err (!%p563_p7)
}
 0x228   :  { %392 = dma.vmem_to_hbm [thread:$0]  %s390_s22, 256, %s791_s5, [#allocation3]  }
 0x229   :  { %567 = dma.done.wait [#allocation3], 256  }
 0x22a   :  { %568 = vsyncadd [#allocation3], 4294967040 }
 0x22b   :  { %396 = vsyncpa [#allocation3], 1 }

</bundles_post_ra>
